<compile_context>
chip_gen: v7x
topology: tpu7x:2x2x1
jax: 0.10.0
libtpu: 0.0.40
codegen_flags: <defaults>
</compile_context>

<pallas_src>
import jax
import jax.numpy as jnp
from jax.experimental import pallas as pl
from jax.experimental.pallas import tpu as pltpu

# --- small synthetic sizes (consistent with MixerBlock mode='all') -----------
B = 2          # batch
S = 8          # num_patches (seq)
C = 32         # channels_dim
TH = 16        # token_hid_dim
CH = 64        # channels_hid_dim
EPS = 1e-5     # nn.LayerNorm default eps

B_TILE = B     # one grid step covers the whole (small) batch


def _layernorm(v, gamma, beta):
    mu = jnp.mean(v, axis=-1, keepdims=True)
    var = jnp.mean((v - mu) ** 2, axis=-1, keepdims=True)
    return (v - mu) * jax.lax.rsqrt(var + EPS) * gamma + beta


def _gelu(v):
    # exact (erf-based) GELU, matching torch.nn.functional.gelu default
    return 0.5 * v * (1.0 + jax.lax.erf(v * jnp.float32(0.7071067811865476)))


def mixer_kernel(x_ref,            # (B_TILE, S, C)
                 rowp_ref,         # (8, 128)   packed: g1,be1,g2,be2,cb1,cb2
                 colp_ref,         # (TH+S, 1)  packed column biases: tb1, tb2
                 tw1_ref,          # (TH, S)    token fc1 weight (PyTorch (out,in))
                 tw2_ref,          # (S, TH)    token fc2 weight
                 cw1t_ref,         # (C, CH)    channel fc1 weight, pre-transposed
                 cw2t_ref,         # (CH, C)    channel fc2 weight, pre-transposed
                 o_ref):           # (B_TILE, S, C)
    x = x_ref[...]
    bt = x.shape[0]
    x2 = x.reshape(bt * S, C)                    # fold batch into rows (layout no-op)

    rp = rowp_ref[...]
    g1, be1 = rp[0:1, :C], rp[1:2, :C]
    g2, be2 = rp[2:3, :C], rp[3:4, :C]
    cb1 = rp[4:5, :CH]                           # (1, CH)
    cb2 = rp[5:6, :C]                            # (1, C)
    cp = colp_ref[...]
    tb1c = cp[0:TH, :]                           # (TH, 1) column bias
    tb2c = cp[TH:TH + S, :]                      # (S, 1)  column bias

    w1 = tw1_ref[...]                            # (TH, S)
    w2 = tw2_ref[...]                            # (S, TH)

    # ---- norm1 (over channels) on the whole (bt*S, C) slab ----
    y2 = _layernorm(x2, g1, be1)

    # ---- token mixing, left-multiplied: no transposes, C stays on lanes ----
    tok_rows = []
    for b in range(bt):                          # static, fully unrolled (tiny bt)
        yb = y2[b * S:(b + 1) * S, :]            # (S, C) static sublane slice
        h = _gelu(jnp.dot(w1, yb, preferred_element_type=jnp.float32) + tb1c)       # (TH, C)
        tok_rows.append(jnp.dot(w2, h, preferred_element_type=jnp.float32) + tb2c)  # (S, C)
    x1 = x2 + jnp.concatenate(tok_rows, axis=0)  # residual, (bt*S, C)

    # ---- norm2 + channel mixing on the flattened slab ----
    z = _layernorm(x1, g2, be2)                                                       # (bt*S, C)
    h2 = _gelu(jnp.dot(z, cw1t_ref[...], preferred_element_type=jnp.float32) + cb1)   # (bt*S, CH)
    z2 = jnp.dot(h2, cw2t_ref[...], preferred_element_type=jnp.float32) + cb2         # (bt*S, C)

    o_ref[...] = (x1 + z2).reshape(bt, S, C)


def mixer_block(x, params):
    """x: (B, S, C) float32. params: PyTorch-convention weights (see init_params)."""
    b = x.shape[0]
    assert b % B_TILE == 0

    # Pack the ten tiny per-feature params into two slabs (two DMAs instead of ten).
    rowp = jnp.zeros((8, 128), jnp.float32)
    rowp = rowp.at[0, :C].set(params["g1"])
    rowp = rowp.at[1, :C].set(params["be1"])
    rowp = rowp.at[2, :C].set(params["g2"])
    rowp = rowp.at[3, :C].set(params["be2"])
    rowp = rowp.at[4, :CH].set(params["cb1"])
    rowp = rowp.at[5, :C].set(params["cb2"])
    colp = jnp.concatenate([params["tb1"], params["tb2"]]).reshape(TH + S, 1)

    # Pre-transpose channel-mixing weights once (outside the kernel).
    cw1t = params["cw1"].T          # (C, CH)
    cw2t = params["cw2"].T          # (CH, C)

    def rep(shape):                 # replicated (whole-array) block
        return pl.BlockSpec(shape, lambda i, _s=shape: tuple(0 for _ in _s))

    grid = (b // B_TILE,)
    return pl.pallas_call(
        mixer_kernel,
        out_shape=jax.ShapeDtypeStruct((b, S, C), jnp.float32),
        grid_spec=pltpu.PrefetchScalarGridSpec(
            num_scalar_prefetch=0,
            grid=grid,
            in_specs=[
                pl.BlockSpec((B_TILE, S, C), lambda i: (i, 0, 0)),   # x (batch tile)
                rep((8, 128)),                                       # packed row params
                rep((TH + S, 1)),                                    # packed column biases
                rep((TH, S)), rep((S, TH)),                          # token-mixing weights
                rep((C, CH)), rep((CH, C)),                          # channel weights (pre-T)
            ],
            out_specs=pl.BlockSpec((B_TILE, S, C), lambda i: (i, 0, 0)),
        ),
        compiler_params=pltpu.CompilerParams(
            dimension_semantics=("parallel",)),   # batch-tile axis can split across TCs (v7x)
    )(x, rowp, colp, params["tw1"], params["tw2"], cw1t, cw2t)


def init_params(key):
    ks = jax.random.split(key, 8)
    scale = 0.02
    return {
        # LayerNorm: weight=1, bias=0 (PyTorch default init)
        "g1": jnp.ones((C,), jnp.float32),
        "be1": jnp.zeros((C,), jnp.float32),
        "g2": jnp.ones((C,), jnp.float32),
        "be2": jnp.zeros((C,), jnp.float32),
        # token_mixing: Linear(S -> TH), Linear(TH -> S); PyTorch W is (out, in)
        "tw1": scale * jax.random.normal(ks[0], (TH, S), jnp.float32),
        "tb1": scale * jax.random.normal(ks[1], (TH,), jnp.float32),
        "tw2": scale * jax.random.normal(ks[2], (S, TH), jnp.float32),
        "tb2": scale * jax.random.normal(ks[3], (S,), jnp.float32),
        # channel_mixing: Linear(C -> CH), Linear(CH -> C)
        "cw1": scale * jax.random.normal(ks[4], (CH, C), jnp.float32),
        "cb1": scale * jax.random.normal(ks[5], (CH,), jnp.float32),
        "cw2": scale * jax.random.normal(ks[6], (C, CH), jnp.float32),
        "cb2": scale * jax.random.normal(ks[7], (C,), jnp.float32),
    }


def mixer_block_ref(x, p):
    """Pure-JAX reference mirroring the PyTorch forward (mode='all')."""
    y = _layernorm(x, p["g1"], p["be1"])
    y = jnp.swapaxes(y, 1, 2)                                   # (B, C, S)
    y = _gelu(y @ p["tw1"].T + p["tb1"]) @ p["tw2"].T + p["tb2"]
    y = jnp.swapaxes(y, 1, 2)                                   # (B, S, C)
    x = x + y
    y = _layernorm(x, p["g2"], p["be2"])
    y = _gelu(y @ p["cw1"].T + p["cb1"]) @ p["cw2"].T + p["cb2"]
    return x + y


if __name__ == "__main__":
    key = jax.random.PRNGKey(0)
    kx, kp = jax.random.split(key)
    x = jax.random.normal(kx, (B, S, C), jnp.float32)
    params = init_params(kp)

    out = mixer_block(x, params)
    out = jax.block_until_ready(out)

    ref = mixer_block_ref(x, params)
    assert out.shape == (B, S, C)
    assert bool(jnp.allclose(out, ref, atol=1e-3, rtol=1e-3))
    print("KERNEL_OK")
</pallas_src>

<mosaic_0001>
module attributes {stable_mosaic.version = 11 : i64} {
  func.func @mixer_kernel(%arg0: i32, %arg1: memref<2x8x32xf32, #tpu.memory_space<vmem>>, %arg2: memref<8x128xf32, #tpu.memory_space<vmem>>, %arg3: memref<24x1xf32, #tpu.memory_space<vmem>>, %arg4: memref<16x8xf32, #tpu.memory_space<vmem>>, %arg5: memref<8x16xf32, #tpu.memory_space<vmem>>, %arg6: memref<32x64xf32, #tpu.memory_space<vmem>>, %arg7: memref<64x32xf32, #tpu.memory_space<vmem>>, %arg8: memref<2x8x32xf32, #tpu.memory_space<vmem>>) attributes {dimension_semantics = [#tpu.dimension_semantics<parallel>], iteration_bounds = array<i64: 1>, scalar_prefetch = 0 : i64, scratch_operands = 0 : i64, tpu.core_type = #tpu.core_type<tc>, window_params = [{transform_indices = @transform_0, window_bounds = array<i64: 2, 8, 32>}, {pipeline_mode = #tpu.pipeline_mode<synchronous>, transform_indices = @transform_1, window_bounds = array<i64: 8, 128>}, {pipeline_mode = #tpu.pipeline_mode<synchronous>, transform_indices = @transform_2, window_bounds = array<i64: 24, 1>}, {pipeline_mode = #tpu.pipeline_mode<synchronous>, transform_indices = @transform_3, window_bounds = array<i64: 16, 8>}, {pipeline_mode = #tpu.pipeline_mode<synchronous>, transform_indices = @transform_4, window_bounds = array<i64: 8, 16>}, {pipeline_mode = #tpu.pipeline_mode<synchronous>, transform_indices = @transform_5, window_bounds = array<i64: 32, 64>}, {pipeline_mode = #tpu.pipeline_mode<synchronous>, transform_indices = @transform_6, window_bounds = array<i64: 64, 32>}, {transform_indices = @transform_7, window_bounds = array<i64: 2, 8, 32>}]} {
    %c0 = arith.constant 0 : index
    %c0_0 = arith.constant 0 : index
    %c0_1 = arith.constant 0 : index
    %0 = vector.load %arg1[%c0, %c0_0, %c0_1] : memref<2x8x32xf32, #tpu.memory_space<vmem>>, vector<2x8x32xf32>
    %1 = vector.shape_cast %0 : vector<2x8x32xf32> to vector<16x32xf32>
    %c0_2 = arith.constant 0 : index
    %c0_3 = arith.constant 0 : index
    %2 = vector.load %arg2[%c0_2, %c0_3] : memref<8x128xf32, #tpu.memory_space<vmem>>, vector<8x128xf32>
    %3 = vector.extract_strided_slice %2 {offsets = [0, 0], sizes = [1, 32], strides = [1, 1]} : vector<8x128xf32> to vector<1x32xf32>
    %4 = vector.extract_strided_slice %2 {offsets = [1, 0], sizes = [1, 32], strides = [1, 1]} : vector<8x128xf32> to vector<1x32xf32>
    %5 = vector.extract_strided_slice %2 {offsets = [2, 0], sizes = [1, 32], strides = [1, 1]} : vector<8x128xf32> to vector<1x32xf32>
    %6 = vector.extract_strided_slice %2 {offsets = [3, 0], sizes = [1, 32], strides = [1, 1]} : vector<8x128xf32> to vector<1x32xf32>
    %7 = vector.extract_strided_slice %2 {offsets = [4, 0], sizes = [1, 64], strides = [1, 1]} : vector<8x128xf32> to vector<1x64xf32>
    %8 = vector.extract_strided_slice %2 {offsets = [5, 0], sizes = [1, 32], strides = [1, 1]} : vector<8x128xf32> to vector<1x32xf32>
    %c0_4 = arith.constant 0 : index
    %c0_5 = arith.constant 0 : index
    %9 = vector.load %arg3[%c0_4, %c0_5] : memref<24x1xf32, #tpu.memory_space<vmem>>, vector<24x1xf32>
    %10 = vector.extract_strided_slice %9 {offsets = [0, 0], sizes = [16, 1], strides = [1, 1]} : vector<24x1xf32> to vector<16x1xf32>
    %11 = vector.extract_strided_slice %9 {offsets = [16, 0], sizes = [8, 1], strides = [1, 1]} : vector<24x1xf32> to vector<8x1xf32>
    %c0_6 = arith.constant 0 : index
    %c0_7 = arith.constant 0 : index
    %12 = vector.load %arg4[%c0_6, %c0_7] : memref<16x8xf32, #tpu.memory_space<vmem>>, vector<16x8xf32>
    %c0_8 = arith.constant 0 : index
    %c0_9 = arith.constant 0 : index
    %13 = vector.load %arg5[%c0_8, %c0_9] : memref<8x16xf32, #tpu.memory_space<vmem>>, vector<8x16xf32>
    %cst = arith.constant dense<0.000000e+00> : vector<16xf32>
    %14 = vector.multi_reduction <add>, %1, %cst [1] : vector<16x32xf32> to vector<16xf32>
    %15 = vector.shape_cast %14 : vector<16xf32> to vector<16x1xf32>
    %cst_10 = arith.constant 3.200000e+01 : f32
    %16 = vector.broadcast %cst_10 : f32 to vector<16x1xf32>
    %17 = arith.divf %15, %16 : vector<16x1xf32>
    %18 = vector.broadcast %17 : vector<16x1xf32> to vector<16x32xf32>
    %19 = arith.subf %1, %18 : vector<16x32xf32>
    %20 = arith.mulf %19, %19 : vector<16x32xf32>
    %cst_11 = arith.constant dense<0.000000e+00> : vector<16xf32>
    %21 = vector.multi_reduction <add>, %20, %cst_11 [1] : vector<16x32xf32> to vector<16xf32>
    %22 = vector.shape_cast %21 : vector<16xf32> to vector<16x1xf32>
    %cst_12 = arith.constant 3.200000e+01 : f32
    %23 = vector.broadcast %cst_12 : f32 to vector<16x1xf32>
    %24 = arith.divf %22, %23 : vector<16x1xf32>
    %25 = vector.broadcast %17 : vector<16x1xf32> to vector<16x32xf32>
    %26 = arith.subf %1, %25 : vector<16x32xf32>
    %cst_13 = arith.constant 9.99999974E-6 : f32
    %27 = vector.broadcast %cst_13 : f32 to vector<16x1xf32>
    %28 = arith.addf %24, %27 : vector<16x1xf32>
    %29 = math.rsqrt %28 : vector<16x1xf32>
    %30 = vector.broadcast %29 : vector<16x1xf32> to vector<16x32xf32>
    %31 = arith.mulf %26, %30 : vector<16x32xf32>
    %32 = vector.broadcast %3 : vector<1x32xf32> to vector<16x32xf32>
    %33 = arith.mulf %31, %32 : vector<16x32xf32>
    %34 = vector.broadcast %4 : vector<1x32xf32> to vector<16x32xf32>
    %35 = arith.addf %33, %34 : vector<16x32xf32>
    %36 = vector.extract_strided_slice %35 {offsets = [0, 0], sizes = [8, 32], strides = [1, 1]} : vector<16x32xf32> to vector<8x32xf32>
    %cst_14 = arith.constant dense<0.000000e+00> : vector<16x32xf32>
    %37 = tpu.matmul %12, %36, %cst_14 {dimension_numbers = #tpu.dot_dimension_numbers<[1], [0], [0], [1], [0, 0, 1, 1], [], []>} : vector<16x8xf32>, vector<8x32xf32>, vector<16x32xf32> -> vector<16x32xf32>
    %38 = vector.broadcast %10 : vector<16x1xf32> to vector<16x32xf32>
    %39 = arith.addf %37, %38 : vector<16x32xf32>
    %cst_15 = arith.constant 5.000000e-01 : f32
    %40 = vector.broadcast %cst_15 : f32 to vector<16x32xf32>
    %41 = arith.mulf %40, %39 : vector<16x32xf32>
    %cst_16 = arith.constant 0.707106769 : f32
    %42 = vector.broadcast %cst_16 : f32 to vector<16x32xf32>
    %43 = arith.mulf %39, %42 : vector<16x32xf32>
    %44 = math.erf %43 : vector<16x32xf32>
    %cst_17 = arith.constant 1.000000e+00 : f32
    %45 = vector.broadcast %cst_17 : f32 to vector<16x32xf32>
    %46 = arith.addf %45, %44 : vector<16x32xf32>
    %47 = arith.mulf %41, %46 : vector<16x32xf32>
    %cst_18 = arith.constant dense<0.000000e+00> : vector<8x32xf32>
    %48 = tpu.matmul %13, %47, %cst_18 {dimension_numbers = #tpu.dot_dimension_numbers<[1], [0], [0], [1], [0, 0, 1, 1], [], []>} : vector<8x16xf32>, vector<16x32xf32>, vector<8x32xf32> -> vector<8x32xf32>
    %49 = vector.broadcast %11 : vector<8x1xf32> to vector<8x32xf32>
    %50 = arith.addf %48, %49 : vector<8x32xf32>
    %51 = vector.extract_strided_slice %35 {offsets = [8, 0], sizes = [8, 32], strides = [1, 1]} : vector<16x32xf32> to vector<8x32xf32>
    %cst_19 = arith.constant dense<0.000000e+00> : vector<16x32xf32>
    %52 = tpu.matmul %12, %51, %cst_19 {dimension_numbers = #tpu.dot_dimension_numbers<[1], [0], [0], [1], [0, 0, 1, 1], [], []>} : vector<16x8xf32>, vector<8x32xf32>, vector<16x32xf32> -> vector<16x32xf32>
    %53 = vector.broadcast %10 : vector<16x1xf32> to vector<16x32xf32>
    %54 = arith.addf %52, %53 : vector<16x32xf32>
    %cst_20 = arith.constant 5.000000e-01 : f32
    %55 = vector.broadcast %cst_20 : f32 to vector<16x32xf32>
    %56 = arith.mulf %55, %54 : vector<16x32xf32>
    %cst_21 = arith.constant 0.707106769 : f32
    %57 = vector.broadcast %cst_21 : f32 to vector<16x32xf32>
    %58 = arith.mulf %54, %57 : vector<16x32xf32>
    %59 = math.erf %58 : vector<16x32xf32>
    %cst_22 = arith.constant 1.000000e+00 : f32
    %60 = vector.broadcast %cst_22 : f32 to vector<16x32xf32>
    %61 = arith.addf %60, %59 : vector<16x32xf32>
    %62 = arith.mulf %56, %61 : vector<16x32xf32>
    %cst_23 = arith.constant dense<0.000000e+00> : vector<8x32xf32>
    %63 = tpu.matmul %13, %62, %cst_23 {dimension_numbers = #tpu.dot_dimension_numbers<[1], [0], [0], [1], [0, 0, 1, 1], [], []>} : vector<8x16xf32>, vector<16x32xf32>, vector<8x32xf32> -> vector<8x32xf32>
    %64 = vector.broadcast %11 : vector<8x1xf32> to vector<8x32xf32>
    %65 = arith.addf %63, %64 : vector<8x32xf32>
    %66 = tpu.concatenate %50, %65 in 0 : vector<8x32xf32>, vector<8x32xf32> -> vector<16x32xf32>
    %67 = arith.addf %1, %66 : vector<16x32xf32>
    %cst_24 = arith.constant dense<0.000000e+00> : vector<16xf32>
    %68 = vector.multi_reduction <add>, %67, %cst_24 [1] : vector<16x32xf32> to vector<16xf32>
    %69 = vector.shape_cast %68 : vector<16xf32> to vector<16x1xf32>
    %cst_25 = arith.constant 3.200000e+01 : f32
    %70 = vector.broadcast %cst_25 : f32 to vector<16x1xf32>
    %71 = arith.divf %69, %70 : vector<16x1xf32>
    %72 = vector.broadcast %71 : vector<16x1xf32> to vector<16x32xf32>
    %73 = arith.subf %67, %72 : vector<16x32xf32>
    %74 = arith.mulf %73, %73 : vector<16x32xf32>
    %cst_26 = arith.constant dense<0.000000e+00> : vector<16xf32>
    %75 = vector.multi_reduction <add>, %74, %cst_26 [1] : vector<16x32xf32> to vector<16xf32>
    %76 = vector.shape_cast %75 : vector<16xf32> to vector<16x1xf32>
    %cst_27 = arith.constant 3.200000e+01 : f32
    %77 = vector.broadcast %cst_27 : f32 to vector<16x1xf32>
    %78 = arith.divf %76, %77 : vector<16x1xf32>
    %79 = vector.broadcast %71 : vector<16x1xf32> to vector<16x32xf32>
    %80 = arith.subf %67, %79 : vector<16x32xf32>
    %cst_28 = arith.constant 9.99999974E-6 : f32
    %81 = vector.broadcast %cst_28 : f32 to vector<16x1xf32>
    %82 = arith.addf %78, %81 : vector<16x1xf32>
    %83 = math.rsqrt %82 : vector<16x1xf32>
    %84 = vector.broadcast %83 : vector<16x1xf32> to vector<16x32xf32>
    %85 = arith.mulf %80, %84 : vector<16x32xf32>
    %86 = vector.broadcast %5 : vector<1x32xf32> to vector<16x32xf32>
    %87 = arith.mulf %85, %86 : vector<16x32xf32>
    %88 = vector.broadcast %6 : vector<1x32xf32> to vector<16x32xf32>
    %89 = arith.addf %87, %88 : vector<16x32xf32>
    %c0_29 = arith.constant 0 : index
    %c0_30 = arith.constant 0 : index
    %90 = vector.load %arg6[%c0_29, %c0_30] : memref<32x64xf32, #tpu.memory_space<vmem>>, vector<32x64xf32>
    %cst_31 = arith.constant dense<0.000000e+00> : vector<16x64xf32>
    %91 = tpu.matmul %89, %90, %cst_31 {dimension_numbers = #tpu.dot_dimension_numbers<[1], [0], [0], [1], [0, 0, 1, 1], [], []>} : vector<16x32xf32>, vector<32x64xf32>, vector<16x64xf32> -> vector<16x64xf32>
    %92 = vector.broadcast %7 : vector<1x64xf32> to vector<16x64xf32>
    %93 = arith.addf %91, %92 : vector<16x64xf32>
    %cst_32 = arith.constant 5.000000e-01 : f32
    %94 = vector.broadcast %cst_32 : f32 to vector<16x64xf32>
    %95 = arith.mulf %94, %93 : vector<16x64xf32>
    %cst_33 = arith.constant 0.707106769 : f32
    %96 = vector.broadcast %cst_33 : f32 to vector<16x64xf32>
    %97 = arith.mulf %93, %96 : vector<16x64xf32>
    %98 = math.erf %97 : vector<16x64xf32>
    %cst_34 = arith.constant 1.000000e+00 : f32
    %99 = vector.broadcast %cst_34 : f32 to vector<16x64xf32>
    %100 = arith.addf %99, %98 : vector<16x64xf32>
    %101 = arith.mulf %95, %100 : vector<16x64xf32>
    %c0_35 = arith.constant 0 : index
    %c0_36 = arith.constant 0 : index
    %102 = vector.load %arg7[%c0_35, %c0_36] : memref<64x32xf32, #tpu.memory_space<vmem>>, vector<64x32xf32>
    %cst_37 = arith.constant dense<0.000000e+00> : vector<16x32xf32>
    %103 = tpu.matmul %101, %102, %cst_37 {dimension_numbers = #tpu.dot_dimension_numbers<[1], [0], [0], [1], [0, 0, 1, 1], [], []>} : vector<16x64xf32>, vector<64x32xf32>, vector<16x32xf32> -> vector<16x32xf32>
    %104 = vector.broadcast %8 : vector<1x32xf32> to vector<16x32xf32>
    %105 = arith.addf %103, %104 : vector<16x32xf32>
    %106 = arith.addf %67, %105 : vector<16x32xf32>
    %107 = vector.shape_cast %106 : vector<16x32xf32> to vector<2x8x32xf32>
    %c0_38 = arith.constant 0 : index
    %c0_39 = arith.constant 0 : index
    %c0_40 = arith.constant 0 : index
    %108 = vector.load %arg8[%c0_38, %c0_39, %c0_40] : memref<2x8x32xf32, #tpu.memory_space<vmem>>, vector<2x8x32xf32>
    tpu.vector_store %arg8[%c0_38, %c0_39, %c0_40], %107 {strides = array<i32>} : memref<2x8x32xf32, #tpu.memory_space<vmem>>, vector<2x8x32xf32>,
    return
  }
  func.func @transform_0(%arg0: i32) -> (i32, i32, i32) {
    %c0_i32 = arith.constant 0 : i32
    %c0_i32_0 = arith.constant 0 : i32
    %c0_i32_1 = arith.constant 0 : i32
    return %arg0, %c0_i32, %c0_i32_0 : i32, i32, i32
  }
  func.func @transform_1(%arg0: i32) -> (i32, i32) {
    %c0_i32 = arith.constant 0 : i32
    %c0_i32_0 = arith.constant 0 : i32
    %c0_i32_1 = arith.constant 0 : i32
    return %c0_i32, %c0_i32_0 : i32, i32
  }
  func.func @transform_2(%arg0: i32) -> (i32, i32) {
    %c0_i32 = arith.constant 0 : i32
    %c0_i32_0 = arith.constant 0 : i32
    %c0_i32_1 = arith.constant 0 : i32
    return %c0_i32, %c0_i32_0 : i32, i32
  }
  func.func @transform_3(%arg0: i32) -> (i32, i32) {
    %c0_i32 = arith.constant 0 : i32
    %c0_i32_0 = arith.constant 0 : i32
    %c0_i32_1 = arith.constant 0 : i32
    return %c0_i32, %c0_i32_0 : i32, i32
  }
  func.func @transform_4(%arg0: i32) -> (i32, i32) {
    %c0_i32 = arith.constant 0 : i32
    %c0_i32_0 = arith.constant 0 : i32
    %c0_i32_1 = arith.constant 0 : i32
    return %c0_i32, %c0_i32_0 : i32, i32
  }
  func.func @transform_5(%arg0: i32) -> (i32, i32) {
    %c0_i32 = arith.constant 0 : i32
    %c0_i32_0 = arith.constant 0 : i32
    %c0_i32_1 = arith.constant 0 : i32
    return %c0_i32, %c0_i32_0 : i32, i32
  }
  func.func @transform_6(%arg0: i32) -> (i32, i32) {
    %c0_i32 = arith.constant 0 : i32
    %c0_i32_0 = arith.constant 0 : i32
    %c0_i32_1 = arith.constant 0 : i32
    return %c0_i32, %c0_i32_0 : i32, i32
  }
  func.func @transform_7(%arg0: i32) -> (i32, i32, i32) {
    %c0_i32 = arith.constant 0 : i32
    %c0_i32_0 = arith.constant 0 : i32
    %c0_i32_1 = arith.constant 0 : i32
    return %arg0, %c0_i32, %c0_i32_0 : i32, i32, i32
  }
}

</mosaic_0001>

<bundles_post_ra>
// kernel: tpu_custom_call.1
= control target key start
LH: loop header
LB: loop body
LE: loop exit
PB: predicated region body
PF: predicated region fallthrough
CT: control target
= control target key end

     0   :  { %vm36_vm0 = vcmask 261120   ;;  %s1020_s0 = inlined_call_operand.vmem [shape: f32[2,8,32], index: 0, kind: input, shape index: {}]   ;;  %s1021_s1 = inlined_call_operand.vmem [shape: f32[8,128], index: 1, kind: input, shape index: {}]   ;;  %s1022_s2 = inlined_call_operand.vmem [shape: f32[24,1], index: 2, kind: input, shape index: {}]   ;;  %s1023_s3 = inlined_call_operand.vmem [shape: f32[16,8], index: 3, kind: input, shape index: {}]   ;;  %s1024_s4 = inlined_call_operand.vmem [shape: f32[8,16], index: 4, kind: input, shape index: {}]   ;;  %s1025_s5 = inlined_call_operand.vmem [shape: f32[32,64], index: 5, kind: input, shape index: {}]   ;;  %s1026_s6 = inlined_call_operand.vmem [shape: f32[64,32], index: 6, kind: input, shape index: {}]   ;;  %s1027_s7 = inlined_call_operand.hbm [shape: f32[2,8,32], index: 7, kind: output, shape index: {}]  }
   0x1   :  { %v890_v0 = vld [vmem:[%s1020_s0] sm:$0xff]  ;;  %v895_v1 = vld [vmem:[%s1020_s0 + $0x8] sm:$0xff] }
   0x2   :  { %12 = vsyncpa [#allocation3], 0  ;;  %v37_v2 = vsel %vm36_vm0, %v890_v0, 0.0  ;;  %v40_v3 = vsel %vm36_vm0, %v895_v1, 0.0  ;;  %v908_v14 = vld [vmem:[%s1023_s3] sm:$0xff]  ;;  %vm86_vm1 = vcmask 64512   ;;  %v64_v23 = vlaneseq }
   0x3   :  { %38 = vadd.xlane.f32.xlu0 %v37_v2  ;;  %41 = vadd.xlane.f32.xlu1 %v40_v3  ;;  %v31_v15 = vld [vmem:[%s1022_s2 + $0x8] sm:$0xff]  ;;  %v30_v16 = vld [vmem:[%s1022_s2] sm:$0xff]  ;;  %v840_v17 = vmov 0   ;;  %v32_v18 = vld [vmem:[%s1022_s2 + $0x10] sm:$0xff]  ;;  %v841_v41 = vmov 0.0|0.0   ;;  %vm842_vm2 = vmmov 0  }
   0x4   :  { %705 = vmatprep.mubr.msk.f32.mxu0 %vm86_vm1, %v908_v14  ;;  %795 = vset.pattern.permute.xlu1 %v840_v17  ;;  %v921_v26 = vshrl.u32 %v64_v23, 7  ;;  %v927_v28 = vld [vmem:[%s1021_s1] sm:$0xff]  ;;  %v34_v39 = vld [vmem:[%s1023_s3 + $0x8] sm:$0xff]  ;;  %v843_v42 = vmov 0.0   ;;  %vm183_vm3 = vcmask 130048   ;;  %vm563_vm4 = vcmask 523264  }
   0x5   :  { %794 = vset.pattern.permute.xlu0 %v840_v17  ;;  %760 = vmatprep.subr.bf16.mxu1 %v841_v41  ;;  %v35_v60 = vld [vmem:[%s1024_s4] sm:$0xff] }
   0x6   :  { %v66_v27 = vsub.s32 0, %v921_v26  ;;  %v72_v29 = vsub.s32 1, %v921_v26  ;;  %724 = vmatprep.mubr.msk.f32.mxu1 %vm842_vm2, %v843_v42 }
   0x8   :  { %v67_v30 = vrot.slane %v927_v28, %v66_v27  ;;  %v73_v34 = vrot.slane %v927_v28, %v72_v29 }
  0x90   :  { %v39_v4 = vpop.xlane.xlu0 %38  ;;  %v42_v5 = vpop.xlane.xlu1 %41 }
  0x91   :  { %v44_v6 = vmul.f32 0.03125, %v39_v4  ;;  %v45_v7 = vmul.f32 0.03125, %v42_v5 }
  0x93   :  { %v46_v8 = vsub.f32 %v890_v0, %v44_v6  ;;  %v47_v9 = vsub.f32 %v895_v1, %v45_v7 }
  0x95   :  { %v48_v10 = vmul.f32 %v46_v8, %v46_v8  ;;  %v49_v11 = vmul.f32 %v47_v9, %v47_v9 }
  0x97   :  { %v50_v12 = vsel %vm36_vm0, %v48_v10, 0.0  ;;  %v53_v13 = vsel %vm36_vm0, %v49_v11, 0.0 }
  0x98   :  { %51 = vadd.xlane.f32.xlu0 %v50_v12  ;;  %54 = vadd.xlane.f32.xlu1 %v53_v13 }
  0xa9   :  { %83 = vperm.xlu1 %795, %v31_v15  }
  0xad   :  { %180 = vperm.xlu1 %795, %v32_v18  }
  0xae   :  { %78 = vperm.xlu0 %794, %v30_v16  }
 0x125   :  { %v52_v19 = vpop.xlane.xlu0 %51  ;;  %v55_v20 = vpop.xlane.xlu1 %54 }
 0x126   :  { %v56_v21 = vmul.f32 0.03125, %v52_v19  ;;  %v57_v22 = vmul.f32 0.03125, %v55_v20 }
 0x128   :  { %v58_v24 = vadd.f32 1e-05, %v56_v21  ;;  %v59_v25 = vadd.f32 1e-05, %v57_v22 }
 0x129   :  { %v84_v44 = vpop.permute.xlu1 %83 }
 0x12a   :  { %796 = vrsqrt.f32 %v58_v24 }
 0x12b   :  { %798 = vrsqrt.f32 %v59_v25 }
 0x12d   :  { %v79_v43 = vpop.permute.xlu0 %78  ;;  %v181_v61 = vpop.permute.xlu1 %180 }
 0x134   :  { %v797_v31 = vpop.eup %796 }
 0x135   :  { %v799_v32 = vpop.eup %798  ;;  %v62_v33 = vmul.f32 %v797_v31, %v46_v8 }
 0x136   :  { %v63_v35 = vmul.f32 %v799_v32, %v47_v9 }
 0x137   :  { %v68_v36 = vmul.f32 %v67_v30, %v62_v33 }
 0x138   :  { %v69_v37 = vmul.f32 %v67_v30, %v63_v35  ;;  %v448_v35 = vsub.s32 3, %v921_v26 }
 0x139   :  { %v74_v38 = vadd.f32 %v73_v34, %v68_v36 }
 0x13a   :  { %v75_v40 = vadd.f32 %v73_v34, %v69_v37  ;;  %v442_v34 = vsub.s32 2, %v921_v26 }
 0x13b   :  { %703 = vmatprep.subr.mxu0 %v74_v38 }
 0x13c   :  { %704 = vmatpush3.msra.mxu0 %v74_v38  ;;  %v443_v36 = vrot.slane %v927_v28, %v442_v34 }
 0x13d   :  { %706 = vmatmul.mubr.msk.f32.vlgmr.msra.gmra.mrb[0].mxu0 %vm86_vm1, %v34_v39  ;;  %757 = vmatprep.subr.bf16.mxu0 %v841_v41 }
 0x13e   :  { %712 = vmatprep.mubr.msk.f32.mxu0 %vm842_vm2, %v843_v42 }
 0x210   :  { %v707_v45 = vpop.f32.mrb[0].mxu0 }
 0x211   :  { %v165_v46 = vadd.f32 %v707_v45, %v84_v44  ;;  %v159_v47 = vpop.f32.mrb[1].mxu0 }
 0x212   :  { %v160_v48 = vadd.f32 %v159_v47, %v79_v43  ;;  %v453_v47 = vld [vmem:[%s1025_s5 + $0x8] sm:$0xff] }
 0x213   :  { %v171_v49 = vmul.f32 0.70710677, %v165_v46  ;;  %v169_v53 = vmul.f32 0.5, %v165_v46  ;;  %v452_v46 = vld [vmem:[%s1025_s5] sm:$0xff] }
 0x214   :  { %v170_v50 = vmul.f32 0.70710677, %v160_v48  ;;  %v168_v55 = vmul.f32 0.5, %v160_v48  ;;  %v763_v48 = vpack.c.bf16 %v453_v47, %v452_v46 }
 0x215   :  { %800 = verf.f32 %v171_v49  ;;  %v454_v49 = vld [vmem:[%s1025_s5 + $0x10] sm:$0xff] }
 0x216   :  { %802 = verf.f32 %v170_v50  ;;  %v455_v50 = vld [vmem:[%s1025_s5 + $0x18] sm:$0xff] }
 0x21f   :  { %v801_v51 = vpop.eup %800 }
 0x220   :  { %v803_v52 = vpop.eup %802  ;;  %v175_v54 = vadd.f32 1.0, %v801_v51  ;;  %v767_v51 = vpack.c.bf16 %v455_v50, %v454_v49 }
 0x221   :  { %v174_v56 = vadd.f32 1.0, %v803_v52 }
 0x222   :  { %v177_v57 = vmul.f32 %v175_v54, %v169_v53 }
 0x223   :  { %v176_v58 = vmul.f32 %v174_v56, %v168_v55 }
 0x225   :  { %v758_v59 = vpack.c.bf16 %v177_v57, %v176_v58 }
 0x227   :  { %759 = vmatpush3.bf16.msra.mxu0 %v758_v59  ;;  %v551_v59 = vld [vmem:[%s1026_s6] sm:$0xff] }
 0x228   :  { %715 = vmatprep.subr.mxu0 %v75_v40 }
 0x22a   :  { %713 = vmatmul.mubr.msk.f32.vlgmr.msra.gmra.mrb[2].mxu0 %vm183_vm3, %v35_v60 }
 0x22b   :  { %716 = vmatpush3.msra.mxu0 %v75_v40  ;;  %717 = vmatprep.mubr.msk.f32.mxu0 %vm86_vm1, %v908_v14 }
 0x22c   :  { %764 = vmatprep.subr.bf16.mxu0 %v763_v48 }
 0x22e   :  { %718 = vmatmul.mubr.msk.f32.vlgmr.msra.gmra.mrb[4].mxu0 %vm86_vm1, %v34_v39  ;;  %v449_v39 = vrot.slane %v927_v28, %v448_v35 }
 0x22f   :  { %766 = vmatpush3.bf16.msra.mxu0 %v763_v48 }
 0x230   :  { %768 = vmatprep.subr.bf16.mxu0 %v767_v51 }
 0x233   :  { %770 = vmatpush3.bf16.msra.mxu0 %v767_v51 }
 0x2fd   :  { %v253_v62 = vpop.f32.mrb[2].mxu0 }
 0x2fe   :  { %v254_v63 = vadd.f32 %v253_v62, %v181_v61  ;;  %v714_v2 = vpop.f32.mrb[3].mxu0  ;;  %v553_v62 = vld [vmem:[%s1026_s6 + $0x10] sm:$0xff] }
 0x300   :  { %v944_v3 = vadd.f32 %v254_v63, %v890_v0  ;;  %v554_v63 = vld [vmem:[%s1026_s6 + $0x18] sm:$0xff] }
 0x301   :  { %v719_v4 = vpop.f32.mrb[4].mxu0  ;;  %v775_v2 = vpack.c.bf16 %v554_v63, %v553_v62 }
 0x302   :  { %v329_v5 = vadd.f32 %v719_v4, %v84_v44  ;;  %v323_v6 = vpop.f32.mrb[5].mxu0  ;;  %v414_v7 = vsel %vm36_vm0, %v944_v3, 0.0  ;;  %v555_v4 = vld [vmem:[%s1026_s6 + $0x20] sm:$0xff] }
 0x303   :  { %v324_v8 = vadd.f32 %v323_v6, %v79_v43  ;;  %415 = vadd.xlane.f32.xlu1 %v414_v7  ;;  %v557_v7 = vld [vmem:[%s1026_s6 + $0x30] sm:$0xff] }
 0x304   :  { %v335_v9 = vmul.f32 0.70710677, %v329_v5  ;;  %v333_v13 = vmul.f32 0.5, %v329_v5  ;;  %v556_v5 = vld [vmem:[%s1026_s6 + $0x28] sm:$0xff] }
 0x305   :  { %v334_v10 = vmul.f32 0.70710677, %v324_v8  ;;  %v332_v15 = vmul.f32 0.5, %v324_v8  ;;  %v779_v6 = vpack.c.bf16 %v556_v5, %v555_v4  ;;  %v558_v8 = vld [vmem:[%s1026_s6 + $0x38] sm:$0xff] }
 0x306   :  { %804 = verf.f32 %v335_v9  ;;  %v783_v9 = vpack.c.bf16 %v558_v8, %v557_v7 }
 0x307   :  { %806 = verf.f32 %v334_v10  ;;  %v458_v10 = vsub.s32 4, %v921_v26 }
 0x310   :  { %v805_v11 = vpop.eup %804 }
 0x311   :  { %v807_v12 = vpop.eup %806  ;;  %v339_v14 = vadd.f32 1.0, %v805_v11  ;;  %v459_v11 = vrot.slane %v927_v28, %v458_v10 }
 0x312   :  { %v338_v16 = vadd.f32 1.0, %v807_v12 }
 0x313   :  { %v341_v0 = vmul.f32 %v339_v14, %v333_v13 }
 0x314   :  { %v340_v17 = vmul.f32 %v338_v16, %v332_v15 }
 0x316   :  { %v761_v18 = vpack.c.bf16 %v341_v0, %v340_v17 }
 0x318   :  { %762 = vmatpush3.bf16.msra.mxu1 %v761_v18 }
 0x31b   :  { %725 = vmatmul.mubr.msk.f32.vlgmr.msra.gmra.mrb[0].mxu1 %vm183_vm3, %v35_v60  ;;  %v552_v60 = vld [vmem:[%s1026_s6 + $0x8] sm:$0xff]  ;;  %s844_s6 = smov [#allocation2]  }
 0x31c   :  { %s654_s13 = sshll.u32 %s844_s6, 4  ;;  %s655_s13 = int_to_ptr.vmem [resolvable:$true] %s654_s13 }
 0x31d   :  { %s816_s2 = scalar_lea.vmem %s655_s13, 256  ;;  %p821_p1 = scmp.lt.s32.totalorder %s655_s13, %s655_s13 }
 0x31e   :  { %p817_p0 = scmp.ne.s32.totalorder %s655_s13, %s816_s2  ;;  %p822_p2 = scmp.lt.s32.totalorder %s816_s2, %s816_s2 }
 0x320   :  { %p823_p3 = por %p822_p2, %p821_p1 }
 0x322   :  { %p824_p4 = pnand %p823_p3, %p817_p0 }
 0x390   :  { %v416_v19 = vpop.xlane.xlu1 %415 }
 0x391   :  { %v420_v20 = vmul.f32 0.03125, %v416_v19 }
 0x393   :  { %v422_v21 = vsub.f32 %v944_v3, %v420_v20 }
 0x395   :  { %v424_v22 = vmul.f32 %v422_v21, %v422_v21 }
 0x397   :  { %v426_v23 = vsel %vm36_vm0, %v424_v22, 0.0 }
 0x398   :  { %427 = vadd.xlane.f32.xlu1 %v426_v23 }
 0x3ee   :  { %v408_v24 = vpop.f32.mrb[0].mxu1 }
 0x3ef   :  { %v409_v25 = vadd.f32 %v408_v24, %v181_v61  ;;  %v726_v27 = vpop.f32.mrb[1].mxu1  ;;  %v771_v61 = vpack.c.bf16 %v552_v60, %v551_v59 }
 0x3f1   :  { %v952_v29 = vadd.f32 %v409_v25, %v895_v1  ;;  %772 = vmatprep.subr.bf16.mxu1 %v771_v61  ;;  %v561_v25 = vsub.s32 5, %v921_v26 }
 0x3f2   :  { %774 = vmatpush3.bf16.msra.mxu1 %v771_v61 }
 0x3f3   :  { %v417_v30 = vsel %vm36_vm0, %v952_v29, 0.0  ;;  %776 = vmatprep.subr.bf16.mxu1 %v775_v2  ;;  %v562_v27 = vrot.slane %v927_v28, %v561_v25 }
 0x3f4   :  { %418 = vadd.xlane.f32.xlu0 %v417_v30 }
 0x3f6   :  { %778 = vmatpush3.bf16.msra.mxu1 %v775_v2 }
 0x3f7   :  { %780 = vmatprep.subr.bf16.mxu1 %v779_v6 }
 0x3fa   :  { %782 = vmatpush3.bf16.msra.mxu1 %v779_v6 }
 0x3fb   :  { %784 = vmatprep.subr.bf16.mxu1 %v783_v9 }
 0x3fe   :  { %786 = vmatpush3.bf16.msra.mxu1 %v783_v9 }
 0x425   :  { %v428_v31 = vpop.xlane.xlu1 %427 }
 0x426   :  { %v432_v32 = vmul.f32 0.03125, %v428_v31 }
 0x428   :  { %v434_v33 = vadd.f32 1e-05, %v432_v32 }
 0x42a   :  { %808 = vrsqrt.f32 %v434_v33 }
 0x434   :  { %v809_v37 = vpop.eup %808 }
 0x435   :  { %v438_v38 = vmul.f32 %v809_v37, %v422_v21 }
 0x437   :  { %v444_v1 = vmul.f32 %v443_v36, %v438_v38 }
 0x439   :  { %v450_v40 = vadd.f32 %v449_v39, %v444_v1 }
 0x43b   :  { %735 = vmatprep.mubr.msk.f32.mxu0 %vm36_vm0, %v450_v40 }
 0x481   :  { %v419_v41 = vpop.xlane.xlu0 %418 }
 0x482   :  { %v421_v42 = vmul.f32 0.03125, %v419_v41 }
 0x484   :  { %v423_v43 = vsub.f32 %v952_v29, %v421_v42 }
 0x486   :  { %v425_v44 = vmul.f32 %v423_v43, %v423_v43 }
 0x488   :  { %v429_v45 = vsel %vm36_vm0, %v425_v44, 0.0 }
 0x489   :  { %430 = vadd.xlane.f32.xlu1 %v429_v45 }
 0x516   :  { %v431_v52 = vpop.xlane.xlu1 %430 }
 0x517   :  { %v433_v53 = vmul.f32 0.03125, %v431_v52 }
 0x519   :  { %v435_v54 = vadd.f32 1e-05, %v433_v53 }
 0x51b   :  { %810 = vrsqrt.f32 %v435_v54 }
 0x525   :  { %v811_v55 = vpop.eup %810 }
 0x526   :  { %v439_v56 = vmul.f32 %v811_v55, %v423_v43 }
 0x528   :  { %v445_v57 = vmul.f32 %v443_v36, %v439_v56 }
 0x52a   :  { %v451_v58 = vadd.f32 %v449_v39, %v445_v57 }
 0x52c   :  { %736 = vmatmul.mubr.msk.f32.vlgmr.msra.gmra.mrb[6].mxu0 %vm36_vm0, %v451_v58 }
 0x5ff   :  { %v737_v12 = vpop.f32.mrb[6].mxu0 }
 0x600   :  { %v538_v13 = vadd.f32 %v737_v12, %v459_v11  ;;  %v532_v14 = vpop.f32.mrb[7].mxu0 }
 0x601   :  { %v533_v15 = vadd.f32 %v532_v14, %v459_v11 }
 0x602   :  { %v544_v16 = vmul.f32 0.70710677, %v538_v13  ;;  %v542_v22 = vmul.f32 0.5, %v538_v13 }
 0x603   :  { %v543_v0 = vmul.f32 0.70710677, %v533_v15  ;;  %v541_v20 = vmul.f32 0.5, %v533_v15 }
 0x604   :  { %812 = verf.f32 %v544_v16 }
 0x605   :  { %814 = verf.f32 %v543_v0 }
 0x60e   :  { %v813_v17 = vpop.eup %812 }
 0x60f   :  { %v815_v18 = vpop.eup %814  ;;  %v548_v19 = vadd.f32 1.0, %v813_v17 }
 0x610   :  { %v547_v21 = vadd.f32 1.0, %v815_v18 }
 0x611   :  { %v550_v24 = vmul.f32 %v548_v19, %v542_v22 }
 0x612   :  { %v549_v23 = vmul.f32 %v547_v21, %v541_v20 }
 0x614   :  { %754 = vmatprep.mubr.msk.f32.mxu1 %vm563_vm4, %v549_v23 }
 0x615   :  { %755 = vmatmul.mubr.msk.f32.vlgmr.msra.gmra.mrb[2].mxu1 %vm563_vm4, %v550_v24 }
 0x6e8   :  { %v756_v30 = vpop.f32.mrb[2].mxu1 }
 0x6e9   :  { %v642_v31 = vadd.f32 %v756_v30, %v562_v27  ;;  %v636_v32 = vpop.f32.mrb[3].mxu1 }
 0x6ea   :  { %v637_v33 = vadd.f32 %v636_v32, %v562_v27 }
 0x6eb   :  { %v646_v34 = vadd.f32 %v642_v31, %v952_v29 }
 0x6ec   :  { %v645_v35 = vadd.f32 %v637_v33, %v944_v3 }
 0x6ed   :  { %648 = vst.msk [vmem:[#allocation2 + $0x8] sm:$0xff] %vm36_vm0, %v646_v34 }
 0x6ee   :  { %647 = vst.msk [vmem:[#allocation2] sm:$0xff] %vm36_vm0, %v645_v35 }
 0x6ef   :  { %827 = shalt.err (!%p824_p4)
}
 0x6f0   :  { %s828_s3 = scalar_lea.hbm %s1027_s7, 256 }
 0x6f1   :  { %p829_p5 = scmp.ne.s32.totalorder %s1027_s7, %s828_s3  ;;  %p832_p6 = scmp.lt.u32.totalorder %s828_s3, %s1027_s7 }
 0x6f3   :  { %p834_p7 = pnand %p832_p6, %p829_p5 }
 0x6f5   :  { %837 = shalt.err (!%p834_p7)
}
 0x6f6   :  { %s845_s18 = smov 128   ;;  %s846_s19 = smov 8  }
 0x6f7   :  { %660 = dma.vmem_to_hbm [thread:$0]  %s655_s13, 256, %s1027_s7, [#allocation3], %s845_s18, %s845_s18, %s846_s19  }
 0x6f8   :  { %838 = dma.done.wait [#allocation3], 256  }
 0x6f9   :  { %839 = vsyncadd [#allocation3], 4294967040 }
 0x6fa   :  { %664 = vsyncpa [#allocation3], 1 }

</bundles_post_ra>
